<compile_context>
chip_gen: v7x
topology: tpu7x:2x2x1
jax: 0.10.0
libtpu: 0.0.40
codegen_flags: <defaults>
</compile_context>

<pallas_src>
import jax
import jax.numpy as jnp
import numpy as np
from jax import lax
from jax.experimental import pallas as pl
from jax.experimental.pallas import tpu as pltpu


def _round_up(x, m):
    return ((x + m - 1) // m) * m


def self_attention(x_nchw, wf, wg, wh, bf, bg, bh, gamma, *, tj=None):
    """x_nchw: (B, C, H, W) f32.  wf/wg/wh are the (out, in) 1x1-conv matrices
    (already spectrally normalized), bf/bg/bh their biases.  Returns (B,C,H,W)."""
    B, C, H, W = x_nchw.shape
    HW = H * W
    C8 = wf.shape[0]
    seg = _round_up(max(C8, 1), 16)      # 16-row aligned slices (bf16 sublane packing)
    Ctot = 2 * seg + C                   # fused, padded projection output channels
    HWp = _round_up(HW, 128)             # lane-dense spatial axis

    # --- fused / padded weight + bias stack (channels-major: P = W_all @ x + b) ---
    w_all = jnp.zeros((Ctot, C), jnp.float32)
    w_all = w_all.at[0:C8, :].set(wf.astype(jnp.float32))
    w_all = w_all.at[seg:seg + C8, :].set(wg.astype(jnp.float32))
    w_all = w_all.at[2 * seg:2 * seg + C, :].set(wh.astype(jnp.float32))
    w_all_bf = w_all.astype(jnp.bfloat16)            # bf16 MXU operand

    b_all = jnp.zeros((Ctot, 1), jnp.float32)        # padded rows stay exactly zero
    b_all = b_all.at[0:C8, 0].set(bf.astype(jnp.float32))
    b_all = b_all.at[seg:seg + C8, 0].set(bg.astype(jnp.float32))
    b_all = b_all.at[2 * seg:2 * seg + C, 0].set(bh.astype(jnp.float32))

    # --- glue: NCHW -> (B, C, HW) is a pure reshape; pad HW to 128 multiple ---
    x_cm = x_nchw.reshape(B, C, HW).astype(jnp.float32)
    if HWp != HW:
        x_cm = jnp.pad(x_cm, ((0, 0), (0, 0), (0, HWp - HW)))
    gamma2 = jnp.asarray(gamma, jnp.float32).reshape(1, 1)

    # --- per-generation VMEM budget -> column tile TJ ---
    try:
        info = pltpu.get_tpu_info()
        phys_vmem = int(getattr(info, "vmem_capacity_bytes", 0)) or (64 << 20)
    except Exception:
        phys_vmem = 64 << 20                         # conservative (v7x per-TC)
    vmem_limit = int(min(phys_vmem * 3 // 4, 100 << 20))

    if tj is None:
        # x block (2x f32) + bf16 projection scratch + weights + per-step map temps.
        fixed = 2 * C * HWp * 4 + Ctot * HWp * 2 + 2 * Ctot * C * 2 + 2 * Ctot * 4
        tj = 128
        t = 128
        while t <= min(HWp, 1024):
            if HWp % t == 0:
                need = fixed + 2 * C * t * 4 + 2 * HWp * t * (4 + 2)  # att f32 + E bf16
                if need <= vmem_limit:
                    tj = t
            t += 128
    TJ = int(tj)
    assert TJ % 128 == 0 and HWp % TJ == 0
    n_j = HWp // TJ

    def kernel(x_ref, w_ref, b_ref, gamma_ref, o_ref, p_ref):
        j = pl.program_id(1)

        # Fused 1x1 convolutions: one bf16 MXU matmul per batch element, result kept
        # resident in bf16 VMEM scratch across all column steps.
        @pl.when(j == 0)
        def _():
            x_bf = x_ref[...].astype(jnp.bfloat16)                       # (C, HWp)
            p = jnp.dot(w_ref[...], x_bf,
                        preferred_element_type=jnp.float32)              # (Ctot, HWp)
            p_ref[...] = (p + b_ref[...]).astype(jnp.bfloat16)

        col0 = pl.multiple_of(j * TJ, 128)

        f = p_ref[0:seg, :]                               # (seg, HWp) bf16
        g = p_ref[seg:2 * seg, pl.ds(col0, TJ)]           # (seg, TJ)  bf16
        h = p_ref[2 * seg:Ctot, :]                        # (C,   HWp) bf16

        # Attention logits A[i, jj] = sum_k f[k, i] * g[k, jj]
        # (contraction on axis 0 of both operands -> no materialized transpose).
        att = lax.dot_general(f, g, (((0,), (0,)), ((), ())),
                              preferred_element_type=jnp.float32)        # (HWp, TJ)

        # torch softmax(dim=-2): normalize each column jj over i (axis 0).
        # Normalization is DEFERRED past the second matmul.
        att = att - jnp.max(att, axis=0, keepdims=True)
        e = jnp.exp(att)
        if HWp != HW:
            rows = lax.broadcasted_iota(jnp.int32, (HWp, TJ), 0)
            e = jnp.where(rows < HW, e, 0.0)              # padded rows contribute 0
        s = jnp.sum(e, axis=0, keepdims=True)             # (1, TJ) f32 column sums

        # out[c, jj] = sum_i h[c, i] * E[i, jj]  -> native bf16 matmul, no transpose.
        out_un = jnp.dot(h, e.astype(jnp.bfloat16),
                         preferred_element_type=jnp.float32)             # (C, TJ)
        out = out_un * pl.reciprocal(s)                   # deferred softmax denom

        x_blk = x_ref[:, pl.ds(col0, TJ)]                 # fresh read for residual
        o_ref[...] = gamma_ref[0, 0] * out + x_blk

    flops = 2 * B * (Ctot * C * HWp + seg * HWp * HWp + C * HWp * HWp)
    cost = pl.CostEstimate(
        flops=int(flops),
        transcendentals=int(B * HWp * HWp),
        bytes_accessed=int(2 * B * C * HWp * 4 + Ctot * C * 2 + Ctot * 4 + 4))

    out_cm = pl.pallas_call(
        kernel,
        out_shape=jax.ShapeDtypeStruct((B, C, HWp), jnp.float32),
        grid=(B, n_j),
        in_specs=[
            pl.BlockSpec((None, C, HWp), lambda b, j: (b, 0, 0)),   # x, one batch/step
            pl.BlockSpec((Ctot, C), lambda b, j: (0, 0)),           # fused W (bf16)
            pl.BlockSpec((Ctot, 1), lambda b, j: (0, 0)),           # fused bias (f32)
            pl.BlockSpec(memory_space=pltpu.MemorySpace.SMEM),      # gamma scalar
        ],
        out_specs=pl.BlockSpec((None, C, TJ), lambda b, j: (b, 0, j)),
        scratch_shapes=[pltpu.VMEM((Ctot, HWp), jnp.bfloat16)],     # fused projection
        compiler_params=pltpu.CompilerParams(
            dimension_semantics=("parallel", "arbitrary"),
            vmem_limit_bytes=vmem_limit),
        cost_estimate=cost,
    )(x_cm, w_all_bf, b_all, gamma2)

    if HWp != HW:
        out_cm = out_cm[:, :, :HW]
    # glue: (B, C, HW) -> NCHW is again a pure reshape.
    return out_cm.reshape(B, C, H, W)


def spectral_normalize(w):
    """Divide the (out, in) matrix by its largest singular value (the fixed point
    of nn.utils.spectral_norm's power iteration at inference)."""
    sigma = jnp.linalg.svd(w, compute_uv=False)[0]
    return w / sigma


def reference_jax(x, wf, wg, wh, bf, bg, bh, gamma):
    """Plain-JAX (f32) mirror of the PyTorch forward, for correctness checking."""
    B, C, H, W = x.shape
    HW = H * W
    xt = x.reshape(B, C, HW)                                       # (B, C, HW)
    f = jnp.einsum('oc,bcn->bon', wf, xt) + bf[None, :, None]      # (B, C/8, HW)
    g = jnp.einsum('oc,bcn->bon', wg, xt) + bg[None, :, None]
    h = jnp.einsum('oc,bcn->bon', wh, xt) + bh[None, :, None]      # (B, C, HW)
    att = jnp.einsum('bki,bkj->bij', f, g)                         # (B, HW, HW)
    att = jax.nn.softmax(att, axis=-2)
    out = jnp.einsum('bci,bij->bcj', h, att).reshape(B, C, H, W)
    return gamma * out + x


if __name__ == "__main__":
    B, C, H, W = 2, 32, 16, 16          # HW = 256 (lane dense), C//8 = 4
    C8 = C // 8

    key = jax.random.PRNGKey(0)
    kx, kf, kg, kh, kbf, kbg, kbh = jax.random.split(key, 7)

    x = jax.random.normal(kx, (B, C, H, W), jnp.float32)

    # Conv2d(C, Cout, 1) weights are (Cout, C, 1, 1); use the squeezed (Cout, C)
    # matrices, spectrally normalized (as nn.utils.spectral_norm does at forward).
    wf = spectral_normalize(jax.random.normal(kf, (C8, C), jnp.float32) * 0.2)
    wg = spectral_normalize(jax.random.normal(kg, (C8, C), jnp.float32) * 0.2)
    wh = spectral_normalize(jax.random.normal(kh, (C, C), jnp.float32) * 0.2)
    bf = jax.random.normal(kbf, (C8,), jnp.float32) * 0.05
    bg = jax.random.normal(kbg, (C8,), jnp.float32) * 0.05
    bh = jax.random.normal(kbh, (C,), jnp.float32) * 0.05

    # Module __init__ sets gamma = 0 (output would equal x); use a nonzero
    # deterministic value so the attention path is actually exercised.
    gamma = jnp.float32(0.5)

    # tj=128 forces a 2-step column grid so the per-batch projection scratch
    # (pl.when(j==0)) path is exercised even at this small HW.
    out = jax.block_until_ready(
        self_attention(x, wf, wg, wh, bf, bg, bh, gamma, tj=128))

    ref = reference_jax(x, wf, wg, wh, bf, bg, bh, gamma)
    # bf16 MXU inputs (projection, logits, h@E) => relaxed tolerance vs f32 reference.
    np.testing.assert_allclose(np.asarray(out), np.asarray(ref),
                               rtol=2e-2, atol=2e-2)

    print("KERNEL_OK")
</pallas_src>

<mosaic_0001>
module attributes {stable_mosaic.version = 11 : i64} {
  func.func @kernel(%arg0: i32, %arg1: i32, %arg2: memref<1x32x256xf32, #tpu.memory_space<vmem>>, %arg3: memref<64x32xbf16, #tpu.memory_space<vmem>>, %arg4: memref<64x1xf32, #tpu.memory_space<vmem>>, %arg5: memref<1x1xf32, #tpu.memory_space<smem>>, %arg6: memref<1x32x128xf32, #tpu.memory_space<vmem>>, %arg7: memref<64x256xbf16, #tpu.memory_space<vmem>>) attributes {dimension_semantics = [#tpu.dimension_semantics<parallel>, #tpu.dimension_semantics<arbitrary>], iteration_bounds = array<i64: 2, 2>, scalar_prefetch = 0 : i64, scratch_operands = 1 : i64, tpu.core_type = #tpu.core_type<tc>, window_params = [{transform_indices = @transform_0, window_bounds = array<i64: 1, 32, 256>}, {pipeline_mode = #tpu.pipeline_mode<synchronous>, transform_indices = @transform_1, window_bounds = array<i64: 64, 32>}, {pipeline_mode = #tpu.pipeline_mode<synchronous>, transform_indices = @transform_2, window_bounds = array<i64: 64, 1>}, {transform_indices = @transform_3, window_bounds = array<i64: 1, 1>}, {transform_indices = @transform_4, window_bounds = array<i64: 1, 32, 128>}]} {
    %c0_i32 = arith.constant 0 : i32
    %0 = arith.cmpi eq, %arg1, %c0_i32 : i32
    %1 = arith.extui %0 : i1 to i32
    %c0_i32_0 = arith.constant 0 : i32
    %2 = arith.cmpi ne, %1, %c0_i32_0 : i32
    scf.if %2 {
      %c0_13 = arith.constant 0 : index
      %c0_14 = arith.constant 0 : index
      %c0_15 = arith.constant 0 : index
      %32 = vector.load %arg2[%c0_13, %c0_14, %c0_15] : memref<1x32x256xf32, #tpu.memory_space<vmem>>, vector<1x32x256xf32>
      %33 = vector.shape_cast %32 : vector<1x32x256xf32> to vector<32x256xf32>
      %34 = arith.truncf %33 : vector<32x256xf32> to vector<32x256xbf16>
      %c0_16 = arith.constant 0 : index
      %c0_17 = arith.constant 0 : index
      %35 = vector.load %arg3[%c0_16, %c0_17] : memref<64x32xbf16, #tpu.memory_space<vmem>>, vector<64x32xbf16>
      %cst_18 = arith.constant dense<0.000000e+00> : vector<64x256xf32>
      %36 = tpu.matmul %35, %34, %cst_18 {dimension_numbers = #tpu.dot_dimension_numbers<[1], [0], [0], [1], [0, 0, 1, 1], [], []>} : vector<64x32xbf16>, vector<32x256xbf16>, vector<64x256xf32> -> vector<64x256xf32>
      %c0_19 = arith.constant 0 : index
      %c0_20 = arith.constant 0 : index
      %37 = vector.load %arg4[%c0_19, %c0_20] : memref<64x1xf32, #tpu.memory_space<vmem>>, vector<64x1xf32>
      %38 = vector.broadcast %37 : vector<64x1xf32> to vector<64x256xf32>
      %39 = arith.addf %36, %38 : vector<64x256xf32>
      %40 = arith.truncf %39 : vector<64x256xf32> to vector<64x256xbf16>
      %c0_21 = arith.constant 0 : index
      %c0_22 = arith.constant 0 : index
      %41 = vector.load %arg7[%c0_21, %c0_22] : memref<64x256xbf16, #tpu.memory_space<vmem>>, vector<64x256xbf16>
      tpu.vector_store %arg7[%c0_21, %c0_22], %40 {strides = array<i32>} : memref<64x256xbf16, #tpu.memory_space<vmem>>, vector<64x256xbf16>,
    } else {
    }
    %c128_i32 = arith.constant 128 : i32
    %3 = arith.muli %arg1, %c128_i32 : i32
    %4 = tpu.assume_multiple %3, 128 : i32
    %c0 = arith.constant 0 : index
    %c0_1 = arith.constant 0 : index
    %5 = vector.load %arg7[%c0, %c0_1] : memref<64x256xbf16, #tpu.memory_space<vmem>>, vector<16x256xbf16>
    %c16 = arith.constant 16 : index
    %6 = arith.index_cast %4 : i32 to index
    %7 = vector.load %arg7[%c16, %6] : memref<64x256xbf16, #tpu.memory_space<vmem>>, vector<16x128xbf16>
    %c32 = arith.constant 32 : index
    %c0_2 = arith.constant 0 : index
    %8 = vector.load %arg7[%c32, %c0_2] : memref<64x256xbf16, #tpu.memory_space<vmem>>, vector<32x256xbf16>
    %cst = arith.constant dense<0.000000e+00> : vector<256x128xf32>
    %9 = tpu.matmul %5, %7, %cst {dimension_numbers = #tpu.dot_dimension_numbers<[0], [0], [1], [1], [0, 1, 1, 1], [], []>} : vector<16x256xbf16>, vector<16x128xbf16>, vector<256x128xf32> -> vector<256x128xf32>
    %cst_3 = arith.constant dense<0xFF800000> : vector<128xf32>
    %10 = vector.multi_reduction <maximumf>, %9, %cst_3 [0] : vector<256x128xf32> to vector<128xf32>
    %11 = vector.shape_cast %10 : vector<128xf32> to vector<1x128xf32>
    %12 = vector.broadcast %11 : vector<1x128xf32> to vector<256x128xf32>
    %13 = arith.subf %9, %12 : vector<256x128xf32>
    %14 = math.exp %13 : vector<256x128xf32>
    %cst_4 = arith.constant dense<0.000000e+00> : vector<128xf32>
    %15 = vector.multi_reduction <add>, %14, %cst_4 [0] : vector<256x128xf32> to vector<128xf32>
    %16 = vector.shape_cast %15 : vector<128xf32> to vector<1x128xf32>
    %17 = arith.truncf %14 : vector<256x128xf32> to vector<256x128xbf16>
    %cst_5 = arith.constant dense<0.000000e+00> : vector<32x128xf32>
    %18 = tpu.matmul %8, %17, %cst_5 {dimension_numbers = #tpu.dot_dimension_numbers<[1], [0], [0], [1], [0, 0, 1, 1], [], []>} : vector<32x256xbf16>, vector<256x128xbf16>, vector<32x128xf32> -> vector<32x128xf32>
    %19 = tpu.reciprocal %16 : vector<1x128xf32> -> vector<1x128xf32>
    %20 = vector.broadcast %19 : vector<1x128xf32> to vector<32x128xf32>
    %21 = arith.mulf %18, %20 : vector<32x128xf32>
    %c0_6 = arith.constant 0 : index
    %c0_7 = arith.constant 0 : index
    %22 = arith.index_cast %4 : i32 to index
    %23 = vector.load %arg2[%c0_6, %c0_7, %22] : memref<1x32x256xf32, #tpu.memory_space<vmem>>, vector<1x32x128xf32>
    %24 = vector.shape_cast %23 : vector<1x32x128xf32> to vector<32x128xf32>
    %c0_8 = arith.constant 0 : index
    %c0_9 = arith.constant 0 : index
    %25 = memref.load %arg5[%c0_8, %c0_9] : memref<1x1xf32, #tpu.memory_space<smem>>
    %26 = vector.broadcast %25 : f32 to vector<32x128xf32>
    %27 = arith.mulf %26, %21 : vector<32x128xf32>
    %28 = arith.addf %27, %24 : vector<32x128xf32>
    %c0_10 = arith.constant 0 : index
    %c0_11 = arith.constant 0 : index
    %c0_12 = arith.constant 0 : index
    %29 = vector.load %arg6[%c0_10, %c0_11, %c0_12] : memref<1x32x128xf32, #tpu.memory_space<vmem>>, vector<1x32x128xf32>
    %30 = vector.shape_cast %29 : vector<1x32x128xf32> to vector<32x128xf32>
    %31 = vector.shape_cast %28 : vector<32x128xf32> to vector<1x32x128xf32>
    tpu.vector_store %arg6[%c0_10, %c0_11, %c0_12], %31 {strides = array<i32>} : memref<1x32x128xf32, #tpu.memory_space<vmem>>, vector<1x32x128xf32>,
    return
  }
  func.func @transform_0(%arg0: i32, %arg1: i32) -> (i32, i32, i32) {
    %c0_i32 = arith.constant 0 : i32
    %c0_i32_0 = arith.constant 0 : i32
    %c0_i32_1 = arith.constant 0 : i32
    return %arg0, %c0_i32, %c0_i32_0 : i32, i32, i32
  }
  func.func @transform_1(%arg0: i32, %arg1: i32) -> (i32, i32) {
    %c0_i32 = arith.constant 0 : i32
    %c0_i32_0 = arith.constant 0 : i32
    %c0_i32_1 = arith.constant 0 : i32
    return %c0_i32, %c0_i32_0 : i32, i32
  }
  func.func @transform_2(%arg0: i32, %arg1: i32) -> (i32, i32) {
    %c0_i32 = arith.constant 0 : i32
    %c0_i32_0 = arith.constant 0 : i32
    %c0_i32_1 = arith.constant 0 : i32
    return %c0_i32, %c0_i32_0 : i32, i32
  }
  func.func @transform_3(%arg0: i32, %arg1: i32) -> (i32, i32) {
    %c0_i32 = arith.constant 0 : i32
    %c0_i32_0 = arith.constant 0 : i32
    %c0_i32_1 = arith.constant 0 : i32
    return %c0_i32, %c0_i32_0 : i32, i32
  }
  func.func @transform_4(%arg0: i32, %arg1: i32) -> (i32, i32, i32) {
    %c0_i32 = arith.constant 0 : i32
    %c0_i32_0 = arith.constant 0 : i32
    return %arg0, %c0_i32, %arg1 : i32, i32, i32
  }
}

</mosaic_0001>

<bundles_post_ra>
// kernel: tpu_custom_call.1
= control target key start
LH: loop header
LB: loop body
LE: loop exit
PB: predicated region body
PF: predicated region fallthrough
CT: control target
= control target key end

     0   :  { %s2138_s0 = inlined_call_operand.hbm [shape: f32[2,32,256], index: 0, kind: input, shape index: {}]   ;;  %s2139_s1 = inlined_call_operand.vmem [shape: bf16[64,32], index: 1, kind: input, shape index: {}]   ;;  %s2140_s2 = inlined_call_operand.vmem [shape: f32[64,1], index: 2, kind: input, shape index: {}]   ;;  %s2141_s3 = inlined_call_operand.<no memory space> [shape: f32[1,1], index: 3, kind: input, shape index: {}]   ;;  %s2142_s4 = inlined_call_operand.hbm [shape: f32[2,32,256], index: 4, kind: output, shape index: {}]  }
   0x1   :  { %9 = sst [smem:[#allocation3]] %s2141_s3 }
   0x2   :  { %10 = vsyncpa [#allocation5], 0 }
   0x3   :  { %12 = vsyncpa [#allocation5 + $0x1], 0 }
   0x4   :  { %13 = vsyncpa [#allocation6], 0 }
   0x5   :  { %15 = vsyncpa [#allocation6 + $0x1], 0  ;;  %s1543_s17 = smov 0   ;;  %s1545_s18 = smov 0  }
   0x6   :  { %s1547_s19 = smov 0   ;;  %s1549_s20 = smov 0  }
   0x7   :  { %s1551_s21 = smov 0   ;;  %s1553_s22 = smov 0  }
   0x8   :  { %s1555_s23 = smov 0   ;;  %s1557_s24 = smov 0  }
   0x9   :  { %s1559_s3 = smov 0   ;;  %s1561_s25 = smov 0  }
   0xa   :  { %s1563_s26 = smov 0  }
   0xb LB: > { %s1045_s27 = sadd.s32 4294967295, %s1505_s26   ;;  %s1046_s28 = sadd.s32 4294967294, %s1505_s26   ;;  %s1505_s26 = sphi %s1563_s26, %s21_s26   ;;  %s1501_s25 = sphi %s1561_s25, %s2166_s25   ;;  %s1497_s3 = sphi %s1559_s3, %s2165_s3   ;;  %s1493_s24 = sphi %s1557_s24, %s2164_s24   ;;  %s1489_s23 = sphi %s1555_s23, %s2163_s23   ;;  %s1485_s22 = sphi %s1553_s22, %s2162_s22   ;;  %s1481_s21 = sphi %s1551_s21, %s2161_s21   ;;  %s1477_s20 = sphi %s1549_s20, %s2160_s20   ;;  %s1473_s19 = sphi %s1547_s19, %s2159_s19   ;;  %s1469_s18 = sphi %s1545_s18, %s2158_s18   ;;  %s1465_s17 = sphi %s1543_s17, %s2157_s17  }
   0xc   : > { %s30_s29 = sadd.s32 1, %s1497_s3  ;;  %s33_s30 = sadd.s32 1, %s1501_s25 }
   0xd   : > { %p31_p0 = scmp.ge.s32.totalorder %s30_s29, 2  ;;  %s40_s5 = sadd.s32 1, %s1485_s22 }
   0xe   : > { %p47_p1 = scmp.ne.s32.totalorder %s1485_s22, %s1481_s21  ;;  %p48_p2 = scmp.eq.s32.totalorder %s1505_s26, 0 }
   0xf   : > { %s2168_s29 = smov (%p31_p0, %s30_s29), 0  ;;  %s2170_s30 = smov (!%p31_p0, %s33_s30), %s1501_s25 }
  0x10   : > { %p1607_p3 = por %p48_p2, %p47_p1  ;;  %p53_p4 = scmp.ne.s32.totalorder %s1481_s21, %s1477_s20 }
  0x11   : > { %p35_p5 = scmp.ge.s32.totalorder %s2170_s30, 2  ;;  %p54_p6 = scmp.eq.s32.totalorder %s1045_s27, 0 }
  0x12   : > { %s127_s7 = ssub.s32 %s1497_s3, %s2168_s29  ;;  %s131_s8 = sadd.s32 1, %s1473_s19 }
  0x13   : > { %s2172_s30 = smov (%p35_p5, %s2170_s30), 0  ;;  %p1617_p7 = por %p54_p6, %p53_p4 }
  0x14   : > { %2147 = sst [smem:[#allocation10_spill]] %s2172_s30  ;;  %p141_p8 = scmp.ne.s32.totalorder %s1473_s19, %s1469_s18 }
  0x15   : > { %s37_s10 = ssub.s32 %s1501_s25, %s2172_s30  ;;  %p142_p9 = scmp.eq.s32.totalorder %s1045_s27, 3 }
  0x16   : > { %p38_p10 = scmp.eq.s32.totalorder %s37_s10, 0  ;;  %s128_s11 = sor.u32 %s127_s7, %s37_s10 }
  0x17   : > { %p129_p11 = scmp.eq.s32.totalorder %s128_s11, 0  ;;  %p1625_p12 = por %p142_p9, %p141_p8 }
  0x18   : > { %s1630_s13 = scalar_select %p38_p10, %s1485_s22, %s40_s5  }
  0x19   : > { %s2149_s12 = scalar_select %p1625_p12, 1, 0 }
  0x1a   : > { %s1633_s14 = scalar_select %p129_p11, %s1473_s19, %s131_s8  }
  0x1b   : > { %p147_p13 = scmp.ne.s32.totalorder %s1469_s18, %s1465_s17  ;;  %p148_p0 = scmp.eq.s32.totalorder %s1046_s28, 3 }
  0x1c   : > { %p1184_p1 = scmp.lt.s32.totalorder %s1505_s26, 4  ;;  %s177_s16 = sand.u32 1, %s1485_s22  }
  0x1d   : > { %p1638_p2 = por %p148_p0, %p147_p13  ;;  %s1049_s20 = sshll.u32 %s177_s16, 6 }
  0x1e   : > { %s1088_s27 = sshll.u32 %s1501_s25, 10  ;;  %s181_s5 = scalar_lea.vmem [#allocation4], %s1049_s20 }
  0x1f   : > { %s2150_s15 = scalar_select %p1638_p2, 1, 0 }
  0x20   : > { %s1647_s11 = scalar_lea.hbm %s2138_s0, %s1088_s27  ;;  %s188_s8 = sshll.u32 %s181_s5, 4  ;;  %s1649_s8 = int_to_ptr.vmem [resolvable:$true] %s188_s8 }
  0x21   : > { %p1653_p4 = pnand %p1184_p1, %p1607_p3  ;;  %s1658_s30 = scalar_lea.sflag [#allocation5], %s177_s16 }
  0x22   : > { %s1353_s27 = scalar_lea.hbm %s1647_s11, 1024  ;;  %s1358_s6 = scalar_lea.hbm %s2138_s0, 2048 }
  0x23   : > { %p1354_p6 = scmp.ne.s32.totalorder %s1647_s11, %s1353_s27  ;;  %p1355_p8 = pneg %p1653_p4 }
  0x24   : > { %p1359_p3 = scmp.lt.u32.totalorder %s1647_s11, %s2138_s0  ;;  %p1360_p11 = scmp.lt.u32.totalorder %s1358_s6, %s1353_s27 }
  0x25   : > { %p1356_p9 = pnand %p1355_p8, %p1354_p6  ;;  %p1362_p0 = scmp.lt.u32.totalorder %s1353_s27, %s1647_s11 }
  0x26   : > { %p1361_p13 = por %p1360_p11, %p1359_p3 }
  0x27   : > { %p1357_p10 = pneg %p1356_p9 }
  0x28   : > { %p1363_p1 = por %p1362_p0, %p1361_p13 }
  0x2a   : > { %p1364_p5 = pnand %p1363_p1, %p1357_p10 }
  0x2c   : > { %1367 = shalt.err (!%p1364_p5)
}
  0x2d   : > { %s1368_s16 = scalar_lea.vmem %s1649_s8, 1024  ;;  %s1507_s20 = smov [#allocation4]  }
  0x2e   : > { %p1369_p6 = scmp.ne.s32.totalorder %s1649_s8, %s1368_s16  ;;  %s1373_s7 = sshll.u32 %s1507_s20, 4  ;;  %s1374_s7 = int_to_ptr.vmem [resolvable:$false] %s1373_s7 }
  0x2f   : > { %s1375_s10 = scalar_lea.vmem %s1374_s7, 2048  ;;  %p1376_p12 = scmp.lt.s32.totalorder %s1649_s8, %s1374_s7 }
  0x30   : > { %p1371_p9 = pnand %p1369_p6, %p1355_p8  ;;  %p1377_p3 = scmp.lt.s32.totalorder %s1375_s10, %s1368_s16 }
  0x32   : > { %p1372_p2 = pneg %p1371_p9  ;;  %p1378_p11 = por %p1377_p3, %p1376_p12 }
  0x34   : > { %p1379_p13 = pnand %p1378_p11, %p1372_p2 }
  0x36   : > { %1382 = shalt.err (!%p1379_p13)
}
  0x37   : > { %s1508_s27 = smov 256   ;;  %s1509_s6 = smov 16  }
  0x38   : > { %1179 = dma.hbm_to_vmem [thread:$0]  (!%p1653_p4), %s1647_s11, 1024, %s1649_s8, %s1658_s30, %s1508_s27, %s1508_s27, %s1509_s6  }
  0x39   : > { %p196_p5 = scmp.lt.s32.totalorder %s1505_s26, 5  ;;  %p2152_p8 = scmp.ge.s32.totalorder %s1505_s26, 1 }
  0x3b   : > { %p197_p10 = pnand %p2152_p8, %p196_p5 }
  0x3c   : > { %s202_s5 = sand.u32 (!%p197_p10), 1, %s1481_s21  }
  0x3d   : > { %200 = sbr.rel (%p197_p10) target bundleno = 1025 (0x401), region = 36  ;;  %s1053_s16 = sshll.u32 (!%p197_p10), %s202_s5, 6 }
  0x3e   : > { %s203_s20 = scalar_lea.sflag (!%p197_p10), [#allocation5], %s202_s5  ;;  %s1690_s7 = scalar_lea.vmem (!%p197_p10), [#allocation4], %s1053_s16 }
  0x44   : > { %1456 = dma.done.wait (%p1617_p7), %s203_s20, 1024  }
  0x45   : > { %1458 = vsyncadd (%p1617_p7), %s203_s20, 4294966272  ;;  %s2145_s28 = sand.u32 1, %s1469_s18   ;;  %p1055_p12 = scmp.ne.s32.totalorder %s1489_s23, 0 }
  0x46   : > { %s1054_s30 = sshll.u32 %s2145_s28, 5  ;;  %v237_v0 = vld [vmem:[%s1690_s7 + $0x8] sm:$0xff] (!%p1055_p12)  ;;  %v239_v1 = vld [vmem:[%s1690_s7 + $0x18] sm:$0xff] (!%p1055_p12)  ;;  %v236_v2 = vld [vmem:[%s1690_s7] sm:$0xff] (!%p1055_p12)  ;;  %v1510_v7 = vmov (!%p1055_p12), 0   ;;  %vm324_vm0 = vcmask (!%p1055_p12), 261120  }
  0x47   : > { %s1699_s11 = scalar_lea.vmem [#allocation7], %s1054_s30  ;;  %235 = sbr.rel (%p1055_p12) target bundleno = 309 (0x135), region = 44  ;;  %v245_v3 = vpack.c.bf16 (!%p1055_p12), %v239_v1, %v237_v0  ;;  %v238_v4 = vld [vmem:[%s1690_s7 + $0x10] sm:$0xff] (!%p1055_p12)  ;;  %v241_v5 = vld [vmem:[%s1690_s7 + $0x28] sm:$0xff] (!%p1055_p12)  ;;  %v243_v6 = vld [vmem:[%s1690_s7 + $0x38] sm:$0xff] (!%p1055_p12)  ;;  %369 = vmatprep.mubr.bf16.mxu0 (!%p1055_p12), %v1510_v7  ;;  %389 = vmatprep.mubr.bf16.mxu1 (!%p1055_p12), %v1510_v7 }
  0x48   : > { %v244_v8 = vpack.c.bf16 (!%p1055_p12), %v238_v4, %v236_v2  ;;  %v247_v9 = vpack.c.bf16 (!%p1055_p12), %v243_v6, %v241_v5  ;;  %v240_v10 = vld [vmem:[%s1690_s7 + $0x20] sm:$0xff] (!%p1055_p12)  ;;  %v242_v11 = vld [vmem:[%s1690_s7 + $0x30] sm:$0xff] (!%p1055_p12)  ;;  %1282 = vset.pattern.permute.xlu1 (!%p1055_p12), %v1510_v7  ;;  %1281 = vset.pattern.permute.xlu0 (!%p1055_p12), %v1510_v7  ;;  %v259_v17 = vld [vmem:[%s2140_s2 + $0x18] sm:$0xff] (!%p1055_p12) }
  0x49   : > { %337 = vmatprep.subr.bf16.mxu0 (!%p1055_p12), %v245_v3  ;;  %1168 = vmatprep.subr.bf16.mxu1 (!%p1055_p12), %v245_v3  ;;  %v246_v12 = vpack.c.bf16 (!%p1055_p12), %v242_v11, %v240_v10  ;;  %v258_v13 = vld [vmem:[%s2140_s2 + $0x10] sm:$0xff] (!%p1055_p12)  ;;  %v1283_v14 = vld [vmem:[%s2139_s1] sm:$0xff] (!%p1055_p12)   ;;  %v257_v18 = vld [vmem:[%s2140_s2 + $0x8] sm:$0xff] (!%p1055_p12) }
  0x4a   : > { %338 = vmatpush1.bf16.msra.mxu0 (!%p1055_p12), %v244_v8  ;;  %1170 = vmatpush1.bf16.msra.mxu1 (!%p1055_p12), %v244_v8  ;;  %v1284_v15 = vld [vmem:[%s2139_s1 + $0x10] sm:$0xff] (!%p1055_p12)   ;;  %v256_v16 = vld [vmem:[%s2140_s2] sm:$0xff] (!%p1055_p12)  ;;  %v261_v19 = vld [vmem:[%s2140_s2 + $0x28] sm:$0xff] (!%p1055_p12) }
  0x4b   : > { %339 = vmatprep.subr.bf16.mxu0 (!%p1055_p12), %v247_v9  ;;  %1169 = vmatprep.subr.bf16.mxu1 (!%p1055_p12), %v247_v9  ;;  %v260_v20 = vld [vmem:[%s2140_s2 + $0x20] sm:$0xff] (!%p1055_p12)  ;;  %v1285_v21 = vld [vmem:[%s2139_s1 + $0x8] sm:$0xff] (!%p1055_p12)   ;;  %v1286_v22 = vld [vmem:[%s2139_s1 + $0x18] sm:$0xff] (!%p1055_p12)  }
  0x4c   : > { %276 = vperm.xlu1 (!%p1055_p12), %1282, %v258_v13   ;;  %266 = vperm.xlu0 (!%p1055_p12), %1281, %v256_v16   ;;  %v263_v23 = vld [vmem:[%s2140_s2 + $0x38] sm:$0xff] (!%p1055_p12)  ;;  %v262_v24 = vld [vmem:[%s2140_s2 + $0x30] sm:$0xff] (!%p1055_p12) }
  0x4e   : > { %340 = vmatpush1.bf16.msra.mxu0 %v246_v12  ;;  %1171 = vmatpush1.bf16.msra.mxu1 %v246_v12 }
  0x50   : > { %281 = vperm.xlu1 %1282, %v259_v17   ;;  %271 = vperm.xlu0 %1281, %v257_v18  }
  0x51   : > { %1060 = vmatmul.mubr.msk.bf16.vlgmr.msra.gmra.mrb[0].mxu0 %vm324_vm0, %v1283_v14  ;;  %1062 = vmatmul.mubr.msk.bf16.vlgmr.msra.gmra.mrb[0].mxu1 %vm324_vm0, %v1284_v15 }
  0x52   : > { %379 = vmatprep.mubr.bf16.mxu0 %v1510_v7  ;;  %399 = vmatprep.mubr.bf16.mxu1 %v1510_v7 }
  0x54   : > { %291 = vperm.xlu1 %1282, %v261_v19   ;;  %286 = vperm.xlu0 %1281, %v260_v20  }
  0x58   : > { %301 = vperm.xlu1 %1282, %v263_v23   ;;  %296 = vperm.xlu0 %1281, %v262_v24  }
  0x59   : > { %1061 = vmatmul.mubr.msk.bf16.gmra.mrb[4].mxu0 %vm324_vm0, %v1285_v21  ;;  %1063 = vmatmul.mubr.msk.bf16.gmra.mrb[4].mxu1 %vm324_vm0, %v1286_v22 }
  0xcb   : > { %v277_v25 = vpop.permute.xlu1 %276  ;;  %v267_v26 = vpop.permute.xlu0 %266 }
  0xcf   : > { %v282_v27 = vpop.permute.xlu1 %281  ;;  %v272_v28 = vpop.permute.xlu0 %271 }
  0xd3   : > { %v292_v29 = vpop.permute.xlu1 %291  ;;  %v287_v30 = vpop.permute.xlu0 %286 }
  0xd7   : > { %v302_v51 = vpop.permute.xlu1 %301  ;;  %v297_v52 = vpop.permute.xlu0 %296 }
 0x124   : > { %v371_v31 = vpop.f32.mrb[0].mxu0  ;;  %v391_v32 = vpop.f32.mrb[0].mxu1 }
 0x125   : > { %v373_v33 = vpop.f32.mrb[1].mxu0  ;;  %v393_v34 = vpop.f32.mrb[1].mxu1  ;;  %v372_v37 = vadd.f32 %v371_v31, %v267_v26  ;;  %v392_v38 = vadd.f32 %v391_v32, %v287_v30 }
 0x126   : > { %v375_v35 = vpop.f32.mrb[2].mxu0  ;;  %v395_v36 = vpop.f32.mrb[2].mxu1  ;;  %v374_v43 = vadd.f32 %v373_v33, %v267_v26  ;;  %v394_v44 = vadd.f32 %v393_v34, %v287_v30 }
 0x127   : > { %v376_v39 = vadd.f32 %v375_v35, %v272_v28  ;;  %v396_v40 = vadd.f32 %v395_v36, %v292_v29  ;;  %v377_v41 = vpop.f32.mrb[3].mxu0  ;;  %v397_v42 = vpop.f32.mrb[3].mxu1 }
 0x128   : > { %v378_v45 = vadd.f32 %v377_v41, %v272_v28  ;;  %v398_v46 = vadd.f32 %v397_v42, %v292_v29 }
 0x129   : > { %v410_v47 = vpack.c.bf16 %v376_v39, %v372_v37  ;;  %v414_v48 = vpack.c.bf16 %v396_v40, %v392_v38 }
 0x12a   : > { %v411_v49 = vpack.c.bf16 %v378_v45, %v374_v43  ;;  %v415_v50 = vpack.c.bf16 %v398_v46, %v394_v44 }
 0x12b   : > { %418 = vst [vmem:[#allocation2] sm:$0xff] %v410_v47  ;;  %422 = vst [vmem:[#allocation2 + $0x20] sm:$0xff] %v414_v48 }
 0x12c   : > { %419 = vst [vmem:[#allocation2 + $0x8] sm:$0xff] %v411_v49  ;;  %423 = vst [vmem:[#allocation2 + $0x28] sm:$0xff] %v415_v50  ;;  %v381_v53 = vpop.f32.mrb[4].mxu0  ;;  %v401_v54 = vpop.f32.mrb[4].mxu1 }
 0x12d   : > { %v383_v55 = vpop.f32.mrb[5].mxu0  ;;  %v403_v56 = vpop.f32.mrb[5].mxu1  ;;  %v382_v59 = vadd.f32 %v381_v53, %v277_v25  ;;  %v402_v60 = vadd.f32 %v401_v54, %v297_v52 }
 0x12e   : > { %v385_v57 = vpop.f32.mrb[6].mxu0  ;;  %v405_v58 = vpop.f32.mrb[6].mxu1  ;;  %v384_v1 = vadd.f32 %v383_v55, %v277_v25  ;;  %v404_v2 = vadd.f32 %v403_v56, %v297_v52 }
 0x12f   : > { %v386_v61 = vadd.f32 %v385_v57, %v282_v27  ;;  %v406_v62 = vadd.f32 %v405_v58, %v302_v51  ;;  %v387_v63 = vpop.f32.mrb[7].mxu0  ;;  %v407_v0 = vpop.f32.mrb[7].mxu1 }
 0x130   : > { %v388_v3 = vadd.f32 %v387_v63, %v282_v27  ;;  %v408_v4 = vadd.f32 %v407_v0, %v302_v51 }
 0x131   : > { %v412_v5 = vpack.c.bf16 %v386_v61, %v382_v59  ;;  %v416_v6 = vpack.c.bf16 %v406_v62, %v402_v60 }
 0x132   : > { %v413_v7 = vpack.c.bf16 %v388_v3, %v384_v1  ;;  %v417_v8 = vpack.c.bf16 %v408_v4, %v404_v2 }
 0x133   : > { %420 = vst [vmem:[#allocation2 + $0x10] sm:$0xff] %v412_v5  ;;  %424 = vst [vmem:[#allocation2 + $0x30] sm:$0xff] %v416_v6 }
 0x134   : > { %421 = vst [vmem:[#allocation2 + $0x18] sm:$0xff] %v413_v7  ;;  %425 = vst [vmem:[#allocation2 + $0x38] sm:$0xff] %v417_v8 }
 0x135 PF: > { %v427_v9 = vld [vmem:[#allocation2] sm:$0xff]  ;;  %s1064_s28 = sshll.u32 %s1489_s23, 7  ;;  %v428_v11 = vld [vmem:[#allocation2 + $0x8] sm:$0xff]  ;;  %vm470_vm1 = vcmask 130048   ;;  %s926_s30 = sld [smem:[#allocation3]] }
 0x136   : > { %438 = vxpose.xlu0.c.b16.start.end [1/1] (short) %v427_v9, 128  ;;  %s1751_s5 = sshra.s32 %s1064_s28, 7  ;;  %v435_v61 = vld [vmem:[#allocation2 + $0x28] sm:$0xff]  ;;  %s955_s10 = sshll.u32 %s1699_s11, 4  ;;  %s2066_s10 = int_to_ptr.vmem [resolvable:$true] %s955_s10 }
 0x137   : > { %s1065_s16 = sshll.u32 %s1751_s5, 3  ;;  %898 = vmatprep.mubr.bf16.mxu1 %v435_v61  ;;  %s2153_s28 = sand.u32 1, %s1469_s18  }
 0x138   : > { %s432_s20 = scalar_lea.vmem [#allocation2], %s1065_s16  ;;  %s2055_s9 = scalar_lea.vmem %s1690_s7, %s1065_s16 [#allocation4] }
 0x139   : > { %s1084_s7 = sshll.u32 %s1493_s24, 3  ;;  %s2077_s5 = scalar_lea.sflag [#allocation6], %s2153_s28 }
 0x13a   : > { %s952_s8 = sadd.s32 %s1489_s23, %s1084_s7  ;;  %s1383_s16 = scalar_lea.vmem %s2066_s10, 512 }
 0x13b   : > { %v433_v10 = vld [vmem:[%s432_s20 + $0x10] sm:$0xff]  ;;  %s1085_s24 = sshll.u32 %s952_s8, 7  ;;  %p1384_p7 = scmp.ne.s32.totalorder %s2066_s10, %s1383_s16 }
 0x13c   : > { %1134 = vmatprep.subr.bf16.mxu0 %v433_v10  ;;  %s2071_s23 = scalar_lea.hbm %s2142_s4, %s1085_s24  ;;  %p2154_p2 = scmp.ne.s32.totalorder %s2149_s12, 0 }
 0x13d   : > { %1135 = vmatpush3.bf16.msra.mxu0 %v433_v10  ;;  %s1511_s20 = smov [#allocation7]  }
 0x13e   : > { %p1385_p4 = pnand %p1384_p7, %p2154_p2 }
 0x140   : > { %p1386_p0 = pneg %p1385_p4 }
 0x153   : > { %454 = vxpose.xlu0.c.b16.start.end [1/1] (short) %v428_v11, 128 }
 0x19c   : > { %v446_v12 = vpop.trf.xlu0 }
 0x19d   : > { %1136 = vmatprep.mubr.msk.bf16.mxu0 %vm470_vm1, %v446_v12 }
 0x1a0   : > { %v447_v13 = vpop.trf.xlu0 }
 0x1a1   : > { %1137 = vmatmul.mubr.msk.bf16.vlgmr.msra.gmra.mrb[0].mxu0 %vm470_vm1, %v447_v13 }
 0x1a4   : > { %v448_v14 = vpop.trf.xlu0 }
 0x1a5   : > { %1140 = vmatprep.mubr.msk.bf16.mxu0 %vm470_vm1, %v448_v14 }
 0x1a8   : > { %v449_v15 = vpop.trf.xlu0 }
 0x1a9   : > { %1141 = vmatmul.mubr.msk.bf16.gmra.mrb[4].mxu0 %vm470_vm1, %v449_v15 }
 0x1ac   : > { %v450_v16 = vpop.trf.xlu0 }
 0x1ad   : > { %1144 = vmatprep.mubr.msk.bf16.mxu0 %vm470_vm1, %v450_v16 }
 0x1b0   : > { %v451_v17 = vpop.trf.xlu0 }
 0x1b1   : > { %1145 = vmatmul.mubr.msk.bf16.gmra.mrb[8].mxu0 %vm470_vm1, %v451_v17 }
 0x1b4   : > { %v452_v18 = vpop.trf.xlu0 }
 0x1b5   : > { %1148 = vmatprep.mubr.msk.bf16.mxu0 %vm470_vm1, %v452_v18 }
 0x1b8   : > { %v453_v19 = vpop.trf.xlu0 }
 0x1b9   : > { %1149 = vmatmul.mubr.msk.bf16.gmra.mrb[12].mxu0 %vm470_vm1, %v453_v19 }
 0x1bc   : > { %v462_v20 = vpop.trf.xlu0 }
 0x1bd   : > { %1152 = vmatprep.mubr.msk.bf16.mxu0 %vm470_vm1, %v462_v20 }
 0x1c0   : > { %v463_v21 = vpop.trf.xlu0 }
 0x1c1   : > { %1153 = vmatmul.mubr.msk.bf16.gmra.mrb[16].mxu0 %vm470_vm1, %v463_v21 }
 0x1c4   : > { %v464_v22 = vpop.trf.xlu0 }
 0x1c5   : > { %1156 = vmatprep.mubr.msk.bf16.mxu0 %vm470_vm1, %v464_v22 }
 0x1c8   : > { %v465_v23 = vpop.trf.xlu0 }
 0x1c9   : > { %1157 = vmatmul.mubr.msk.bf16.gmra.mrb[20].mxu0 %vm470_vm1, %v465_v23 }
 0x1cc   : > { %v466_v24 = vpop.trf.xlu0 }
 0x1cd   : > { %1160 = vmatprep.mubr.msk.bf16.mxu0 %vm470_vm1, %v466_v24 }
 0x1d0   : > { %v467_v25 = vpop.trf.xlu0 }
 0x1d1   : > { %1161 = vmatmul.mubr.msk.bf16.gmra.mrb[24].mxu0 %vm470_vm1, %v467_v25 }
 0x1d4   : > { %v468_v26 = vpop.trf.xlu0 }
 0x1d5   : > { %1164 = vmatprep.mubr.msk.bf16.mxu0 %vm470_vm1, %v468_v26 }
 0x1d8   : > { %v469_v27 = vpop.trf.xlu0 }
 0x1d9   : > { %1165 = vmatmul.mubr.msk.bf16.gmra.mrb[28].mxu0 %vm470_vm1, %v469_v27 }
 0x274   : > { %v1772_v28 = vpop.f32.mrb[0].mxu0 }
 0x275   : > { %v1774_v29 = vpop.f32.mrb[1].mxu0 }
 0x276   : > { %v1776_v30 = vpop.f32.mrb[2].mxu0 }
 0x277   : > { %v1778_v31 = vpop.f32.mrb[3].mxu0 }
 0x27c   : > { %v1780_v32 = vpop.f32.mrb[4].mxu0 }
 0x27d   : > { %v682_v33 = vmax.f32 %v1772_v28, %v1780_v32  ;;  %v1784_v34 = vpop.f32.mrb[5].mxu0 }
 0x27e   : > { %v680_v35 = vmax.f32 %v1774_v29, %v1784_v34  ;;  %v1788_v36 = vpop.f32.mrb[6].mxu0 }
 0x27f   : > { %v683_v37 = vmax.f32 %v1776_v30, %v1788_v36  ;;  %v1792_v38 = vpop.f32.mrb[7].mxu0 }
 0x280   : > { %v681_v39 = vmax.f32 %v1778_v31, %v1792_v38 }
 0x284   : > { %v1796_v40 = vpop.f32.mrb[8].mxu0 }
 0x285   : > { %v686_v41 = vmax.f32 %v682_v33, %v1796_v40  ;;  %v1799_v42 = vpop.f32.mrb[9].mxu0 }
 0x286   : > { %v684_v43 = vmax.f32 %v680_v35, %v1799_v42  ;;  %v1802_v44 = vpop.f32.mrb[10].mxu0 }
 0x287   : > { %v687_v45 = vmax.f32 %v683_v37, %v1802_v44  ;;  %v1805_v46 = vpop.f32.mrb[11].mxu0 }
 0x288   : > { %v685_v47 = vmax.f32 %v681_v39, %v1805_v46 }
 0x28c   : > { %v1808_v48 = vpop.f32.mrb[12].mxu0 }
 0x28d   : > { %v690_v49 = vmax.f32 %v686_v41, %v1808_v48  ;;  %v1811_v50 = vpop.f32.mrb[13].mxu0 }
 0x28e   : > { %v688_v51 = vmax.f32 %v684_v43, %v1811_v50  ;;  %v1814_v52 = vpop.f32.mrb[14].mxu0 }
 0x28f   : > { %v691_v53 = vmax.f32 %v687_v45, %v1814_v52  ;;  %v1817_v54 = vpop.f32.mrb[15].mxu0 }
 0x290   : > { %v689_v55 = vmax.f32 %v685_v47, %v1817_v54 }
 0x294   : > { %v1820_v56 = vpop.f32.mrb[16].mxu0 }
 0x295   : > { %v694_v57 = vmax.f32 %v690_v49, %v1820_v56  ;;  %v1823_v58 = vpop.f32.mrb[17].mxu0 }
 0x296   : > { %v692_v59 = vmax.f32 %v688_v51, %v1823_v58  ;;  %v1826_v60 = vpop.f32.mrb[18].mxu0 }
 0x297   : > { %v695_v62 = vmax.f32 %v691_v53, %v1826_v60  ;;  %v1829_v63 = vpop.f32.mrb[19].mxu0 }
 0x298   : > { %v693_v0 = vmax.f32 %v689_v55, %v1829_v63 }
 0x29c   : > { %v1832_v1 = vpop.f32.mrb[20].mxu0 }
 0x29d   : > { %v698_v2 = vmax.f32 %v694_v57, %v1832_v1  ;;  %v1835_v3 = vpop.f32.mrb[21].mxu0 }
 0x29e   : > { %v696_v4 = vmax.f32 %v692_v59, %v1835_v3  ;;  %v1838_v5 = vpop.f32.mrb[22].mxu0 }
 0x29f   : > { %v699_v6 = vmax.f32 %v695_v62, %v1838_v5  ;;  %v1841_v7 = vpop.f32.mrb[23].mxu0 }
 0x2a0   : > { %v697_v8 = vmax.f32 %v693_v0, %v1841_v7 }
 0x2a4   : > { %v1844_v9 = vpop.f32.mrb[24].mxu0 }
 0x2a5   : > { %v702_v10 = vmax.f32 %v698_v2, %v1844_v9  ;;  %v1847_v11 = vpop.f32.mrb[25].mxu0 }
 0x2a6   : > { %v700_v12 = vmax.f32 %v696_v4, %v1847_v11  ;;  %v1850_v13 = vpop.f32.mrb[26].mxu0 }
 0x2a7   : > { %v703_v14 = vmax.f32 %v699_v6, %v1850_v13  ;;  %v1853_v15 = vpop.f32.mrb[27].mxu0 }
 0x2a8   : > { %v701_v16 = vmax.f32 %v697_v8, %v1853_v15 }
 0x2ac   : > { %v1856_v17 = vpop.f32.mrb[28].mxu0 }
 0x2ad   : > { %v706_v18 = vmax.f32 %v702_v10, %v1856_v17  ;;  %v1859_v19 = vpop.f32.mrb[29].mxu0 }
 0x2ae   : > { %v704_v20 = vmax.f32 %v700_v12, %v1859_v19  ;;  %v1862_v21 = vpop.f32.mrb[30].mxu0 }
 0x2af   : > { %v707_v22 = vmax.f32 %v703_v14, %v1862_v21  ;;  %v1865_v23 = vpop.f32.mrb[31].mxu0 }
 0x2b0   : > { %v705_v24 = vmax.f32 %v701_v16, %v1865_v23 }
 0x2b1   : > { %v709_v25 = vmax.f32 %v706_v18, %v707_v22 }
 0x2b2   : > { %v708_v26 = vmax.f32 %v704_v20, %v705_v24 }
 0x2b4   : > { %v710_v27 = vmax.f32 %v708_v26, %v709_v25 }
 0x2b6   : > { %v711_v33 = vrot.slane %v710_v27, 4 }
 0x2b8   : > { %v712_v35 = vmax.f32 %v710_v27, %v711_v33 }
 0x2ba   : > { %v713_v37 = vrot.slane %v712_v35, 2 }
 0x2bc   : > { %v714_v39 = vmax.f32 %v712_v35, %v713_v37 }
 0x2be   : > { %v715_v41 = vrot.slane %v714_v39, 1 }
 0x2c0   : > { %v1868_v43 = vmax.f32 %v714_v39, %v715_v41 }
 0x2c2   : > { %v717_v45 = vsub.f32 %v1774_v29, %v1868_v43  ;;  %v718_v47 = vsub.f32 %v1778_v31, %v1868_v43  ;;  %v719_v49 = vsub.f32 %v1772_v28, %v1868_v43  ;;  %v720_v51 = vsub.f32 %v1776_v30, %v1868_v43 }
 0x2c3   : > { %v721_v53 = vsub.f32 %v1784_v34, %v1868_v43  ;;  %v722_v55 = vsub.f32 %v1792_v38, %v1868_v43  ;;  %v723_v57 = vsub.f32 %v1780_v32, %v1868_v43  ;;  %v724_v29 = vsub.f32 %v1788_v36, %v1868_v43 }
 0x2c4   : > { %v725_v31 = vsub.f32 %v1799_v42, %v1868_v43  ;;  %v726_v28 = vsub.f32 %v1805_v46, %v1868_v43  ;;  %v727_v30 = vsub.f32 %v1796_v40, %v1868_v43  ;;  %v728_v34 = vsub.f32 %v1802_v44, %v1868_v43 }
 0x2c5   : > { %v729_v38 = vsub.f32 %v1811_v50, %v1868_v43  ;;  %v730_v32 = vsub.f32 %v1817_v54, %v1868_v43  ;;  %v731_v36 = vsub.f32 %v1808_v48, %v1868_v43  ;;  %v732_v42 = vsub.f32 %v1814_v52, %v1868_v43 }
 0x2c6   : > { %v733_v46 = vsub.f32 %v1823_v58, %v1868_v43  ;;  %v734_v40 = vsub.f32 %v1829_v63, %v1868_v43  ;;  %v735_v44 = vsub.f32 %v1820_v56, %v1868_v43  ;;  %v736_v50 = vsub.f32 %v1826_v60, %v1868_v43 }
 0x2c7   : > { %v737_v54 = vsub.f32 %v1835_v3, %v1868_v43  ;;  %v738_v48 = vsub.f32 %v1841_v7, %v1868_v43  ;;  %v739_v52 = vsub.f32 %v1832_v1, %v1868_v43  ;;  %v740_v58 = vsub.f32 %v1838_v5, %v1868_v43 }
 0x2c8   : > { %v741_v59 = vsub.f32 %v1847_v11, %v1868_v43  ;;  %v742_v56 = vsub.f32 %v1853_v15, %v1868_v43  ;;  %v743_v60 = vsub.f32 %v1844_v9, %v1868_v43  ;;  %v744_v61 = vsub.f32 %v1850_v13, %v1868_v43 }
 0x2c9   : > { %v745_v62 = vsub.f32 %v1859_v19, %v1868_v43  ;;  %v746_v63 = vsub.f32 %v1865_v23, %v1868_v43  ;;  %v747_v0 = vsub.f32 %v1856_v17, %v1868_v43  ;;  %v748_v2 = vsub.f32 %v1862_v21, %v1868_v43 }
 0x2ca   : > { %v749_v3 = vmul.f32 1.442695, %v717_v45  ;;  %v751_v4 = vmul.f32 1.442695, %v718_v47  ;;  %v753_v6 = vmul.f32 1.442695, %v719_v49 }
 0x2cb   : > { %v755_v8 = vmul.f32 1.442695, %v720_v51  ;;  %v757_v10 = vmul.f32 1.442695, %v721_v53  ;;  %v759_v12 = vmul.f32 1.442695, %v722_v55 }
 0x2cc   : > { %1287 = vpow2.f32 %v749_v3  ;;  %v761_v14 = vmul.f32 1.442695, %v723_v57  ;;  %v763_v16 = vmul.f32 1.442695, %v724_v29  ;;  %v765_v18 = vmul.f32 1.442695, %v725_v31 }
 0x2cd   : > { %1289 = vpow2.f32 %v751_v4  ;;  %v767_v20 = vmul.f32 1.442695, %v726_v28  ;;  %v769_v22 = vmul.f32 1.442695, %v727_v30  ;;  %v771_v24 = vmul.f32 1.442695, %v728_v34 }
 0x2ce   : > { %1291 = vpow2.f32 %v753_v6  ;;  %v773_v25 = vmul.f32 1.442695, %v729_v38  ;;  %v775_v26 = vmul.f32 1.442695, %v730_v32  ;;  %v777_v33 = vmul.f32 1.442695, %v731_v36 }
 0x2cf   : > { %1293 = vpow2.f32 %v755_v8  ;;  %v779_v37 = vmul.f32 1.442695, %v732_v42  ;;  %v781_v41 = vmul.f32 1.442695, %v733_v46  ;;  %v783_v51 = vmul.f32 1.442695, %v734_v40 }
 0x2d0   : > { %1295 = vpow2.f32 %v757_v10  ;;  %v785_v55 = vmul.f32 1.442695, %v735_v44  ;;  %v787_v28 = vmul.f32 1.442695, %v736_v50  ;;  %v789_v34 = vmul.f32 1.442695, %v737_v54 }
 0x2d1   : > { %1297 = vpow2.f32 %v759_v12  ;;  %v791_v42 = vmul.f32 1.442695, %v738_v48  ;;  %v793_v40 = vmul.f32 1.442695, %v739_v52  ;;  %v795_v7 = vmul.f32 1.442695, %v740_v58 }
 0x2d2   : > { %1299 = vpow2.f32 %v761_v14  ;;  %v797_v1 = vmul.f32 1.442695, %v741_v59  ;;  %v799_v5 = vmul.f32 1.442695, %v742_v56  ;;  %v801_v11 = vmul.f32 1.442695, %v743_v60 }
 0x2d3   : > { %1301 = vpow2.f32 %v763_v16  ;;  %v803_v15 = vmul.f32 1.442695, %v744_v61  ;;  %v805_v9 = vmul.f32 1.442695, %v745_v62  ;;  %v807_v13 = vmul.f32 1.442695, %v746_v63 }
 0x2d4   : > { %1303 = vpow2.f32 %v765_v18  ;;  %v809_v14 = vmul.f32 1.442695, %v747_v0  ;;  %v811_v18 = vmul.f32 1.442695, %v748_v2 }
 0x2d5   : > { %1305 = vpow2.f32 %v767_v20 }
 0x2d6   : > { %v1934_v27 = vpop.eup %1287  ;;  %1307 = vpow2.f32 %v769_v22 }
 0x2d7   : > { %v1936_v35 = vpop.eup %1289  ;;  %1309 = vpow2.f32 %v771_v24 }
 0x2d8   : > { %v1938_v39 = vpop.eup %1291  ;;  %1311 = vpow2.f32 %v773_v25  ;;  %v813_v45 = vadd.f32 %v1936_v35, %v1934_v27  ;;  %v850_v47 = vpack.c.bf16 %v1936_v35, %v1934_v27 }
 0x2d9   : > { %v1944_v49 = vpop.eup %1293  ;;  %1313 = vpow2.f32 %v775_v26 }
 0x2da   : > { %v1946_v53 = vpop.eup %1295  ;;  %1315 = vpow2.f32 %v777_v33  ;;  %v814_v57 = vadd.f32 %v1938_v39, %v813_v45  ;;  %v851_v29 = vpack.c.bf16 %v1944_v49, %v1938_v39 }
 0x2db   : > { %v1951_v31 = vpop.eup %1297  ;;  %1317 = vpow2.f32 %v779_v37 }
 0x2dc   : > { %v1953_v30 = vpop.eup %1299  ;;  %1319 = vpow2.f32 %v781_v41  ;;  %v815_v38 = vadd.f32 %v1944_v49, %v814_v57  ;;  %v852_v32 = vpack.c.bf16 %v1951_v31, %v1946_v53 }
 0x2dd   : > { %v1958_v36 = vpop.eup %1301  ;;  %1321 = vpow2.f32 %v783_v51 }
 0x2de   : > { %v1963_v46 = vpop.eup %1303  ;;  %1323 = vpow2.f32 %v785_v55  ;;  %v816_v44 = vadd.f32 %v1946_v53, %v815_v38  ;;  %v853_v50 = vpack.c.bf16 %v1958_v36, %v1953_v30 }
 0x2df   : > { %v1971_v54 = vpop.eup %1305  ;;  %1325 = vpow2.f32 %v787_v28 }
 0x2e0   : > { %v1976_v48 = vpop.eup %1307  ;;  %1327 = vpow2.f32 %v789_v34  ;;  %v817_v52 = vadd.f32 %v1951_v31, %v816_v44  ;;  %v854_v3 = vpack.c.bf16 %v1971_v54, %v1963_v46 }
 0x2e1   : > { %v1984_v4 = vpop.eup %1309  ;;  %1329 = vpow2.f32 %v791_v42 }
 0x2e2   : > { %v1989_v58 = vpop.eup %1311  ;;  %1331 = vpow2.f32 %v793_v40  ;;  %v818_v59 = vadd.f32 %v1953_v30, %v817_v52  ;;  %v855_v6 = vpack.c.bf16 %v1984_v4, %v1976_v48 }
 0x2e3   : > { %v1997_v8 = vpop.eup %1313  ;;  %1333 = vpow2.f32 %v795_v7 }
 0x2e4   : > { %v2002_v56 = vpop.eup %1315  ;;  %1335 = vpow2.f32 %v797_v1  ;;  %v819_v60 = vadd.f32 %v1958_v36, %v818_v59  ;;  %v856_v10 = vpack.c.bf16 %v1997_v8, %v1989_v58 }
 0x2e5   : > { %v2010_v12 = vpop.eup %1317  ;;  %1337 = vpow2.f32 %v799_v5 }
 0x2e6   : > { %v1320_v61 = vpop.eup %1319  ;;  %1339 = vpow2.f32 %v801_v11  ;;  %v820_v19 = vadd.f32 %v1963_v46, %v819_v60  ;;  %v857_v62 = vpack.c.bf16 %v2010_v12, %v2002_v56  ;;  %v434_v46 = vld [vmem:[#allocation2 + $0x20] sm:$0xff] }
 0x2e7   : > { %v1322_v16 = vpop.eup %1321  ;;  %1341 = vpow2.f32 %v803_v15 }
 0x2e8   : > { %v1324_v20 = vpop.eup %1323  ;;  %1343 = vpow2.f32 %v805_v9  ;;  %v821_v23 = vadd.f32 %v1971_v54, %v820_v19  ;;  %v858_v63 = vpack.c.bf16 %v1322_v16, %v1320_v61  ;;  %v437_v54 = vld [vmem:[#allocation2 + $0x38] sm:$0xff] }
 0x2e9   : > { %v1326_v22 = vpop.eup %1325  ;;  %1345 = vpow2.f32 %v807_v13 }
 0x2ea   : > { %v1328_v17 = vpop.eup %1327  ;;  %1347 = vpow2.f32 %v809_v14  ;;  %v822_v0 = vadd.f32 %v1976_v48, %v821_v23  ;;  %1106 = vmatprep.subr.bf16.mxu1 %v858_v63  ;;  %v859_v24 = vpack.c.bf16 %v1326_v22, %v1324_v20  ;;  %v927_v14 = vstv %s926_s30  ;;  %v923_v63 = vld [vmem:[%s2055_s9 + $0x10] sm:$0xff]  ;;  %s1387_s30 = sshll.u32 %s1511_s20, 4  ;;  %s1388_s30 = int_to_ptr.vmem [resolvable:$false] %s1387_s30 }
 0x2eb   : > { %v1330_v25 = vpop.eup %1329  ;;  %1349 = vpow2.f32 %v811_v18  ;;  %1107 = vmatpush3.bf16.msra.mxu1 %v850_v47  ;;  %v922_v18 = vld [vmem:[%s2055_s9] sm:$0xff]  ;;  %p1390_p1 = scmp.lt.s32.totalorder %s2066_s10, %s1388_s30 }
 0x2ec   : > { %v1332_v21 = vpop.eup %1331  ;;  %v823_v43 = vadd.f32 %v1984_v4, %v822_v0  ;;  %1108 = vmatprep.subr.bf16.mxu1 %v859_v24  ;;  %v860_v2 = vpack.c.bf16 %v1330_v25, %v1328_v17  ;;  %v436_v4 = vld [vmem:[#allocation2 + $0x30] sm:$0xff] }
 0x2ed   : > { %v1334_v26 = vpop.eup %1333 }
 0x2ee   : > { %v1336_v33 = vpop.eup %1335  ;;  %v824_v37 = vadd.f32 %v1989_v58, %v823_v43  ;;  %v861_v41 = vpack.c.bf16 %v1334_v26, %v1332_v21 }
 0x2ef   : > { %v1338_v45 = vpop.eup %1337  ;;  %1109 = vmatpush3.bf16.msra.mxu1 %v851_v29 }
 0x2f0   : > { %v1340_v51 = vpop.eup %1339  ;;  %v825_v55 = vadd.f32 %v1997_v8, %v824_v37  ;;  %1110 = vmatprep.subr.bf16.mxu1 %v860_v2  ;;  %v862_v27 = vpack.c.bf16 %v1338_v45, %v1336_v33  ;;  %v924_v37 = vld [vmem:[%s2055_s9 + $0x20] sm:$0xff] }
 0x2f1   : > { %v1342_v35 = vpop.eup %1341 }
 0x2f2   : > { %v1344_v47 = vpop.eup %1343  ;;  %v826_v57 = vadd.f32 %v2002_v56, %v825_v55  ;;  %v863_v28 = vpack.c.bf16 %v1342_v35, %v1340_v51 }
 0x2f3   : > { %v1346_v34 = vpop.eup %1345  ;;  %1111 = vmatpush3.bf16.msra.mxu1 %v852_v32 }
 0x2f4   : > { %v1348_v38 = vpop.eup %1347  ;;  %v827_v42 = vadd.f32 %v2010_v12, %v826_v57  ;;  %1112 = vmatprep.subr.bf16.mxu1 %v861_v41  ;;  %v864_v39 = vpack.c.bf16 %v1346_v34, %v1344_v47 }
 0x2f5   : > { %v1350_v49 = vpop.eup %1349 }
 0x2f6   : > { %v828_v29 = vadd.f32 %v1320_v61, %v827_v42  ;;  %v865_v40 = vpack.c.bf16 %v1350_v49, %v1348_v38 }
 0x2f7   : > { %1113 = vmatpush3.bf16.msra.mxu1 %v853_v50 }
 0x2f8   : > { %v829_v44 = vadd.f32 %v1322_v16, %v828_v29  ;;  %1114 = vmatprep.subr.bf16.mxu1 %v862_v27 }
 0x2fa   : > { %v830_v7 = vadd.f32 %v1324_v20, %v829_v44 }
 0x2fb   : > { %1115 = vmatpush3.bf16.msra.mxu1 %v854_v3 }
 0x2fc   : > { %v831_v53 = vadd.f32 %v1326_v22, %v830_v7  ;;  %1116 = vmatprep.subr.bf16.mxu1 %v863_v28 }
 0x2fe   : > { %v832_v31 = vadd.f32 %v1328_v17, %v831_v53 }
 0x2ff   : > { %1117 = vmatpush3.bf16.msra.mxu1 %v855_v6 }
 0x300   : > { %v833_v32 = vadd.f32 %v1330_v25, %v832_v31  ;;  %1118 = vmatprep.subr.bf16.mxu1 %v864_v39 }
 0x302   : > { %v834_v1 = vadd.f32 %v1332_v21, %v833_v32 }
 0x303   : > { %1119 = vmatpush3.bf16.msra.mxu1 %v856_v10 }
 0x304   : > { %v835_v30 = vadd.f32 %v1334_v26, %v834_v1  ;;  %1120 = vmatprep.subr.bf16.mxu1 %v865_v40 }
 0x306   : > { %v836_v36 = vadd.f32 %v1336_v33, %v835_v30 }
 0x307   : > { %1121 = vmatpush3.bf16.msra.mxu1 %v857_v62 }
 0x308   : > { %v837_v50 = vadd.f32 %v1338_v45, %v836_v36 }
 0x30a   : > { %v838_v52 = vadd.f32 %v1340_v51, %v837_v50  ;;  %899 = vmatmul.mubr.bf16.vlgmr.msra.gmra.mrb[0].mxu1 %v434_v46  ;;  %v925_v51 = vld [vmem:[%s2055_s9 + $0x30] sm:$0xff]  ;;  %s1389_s9 = scalar_lea.vmem %s1388_s30, 1024 }
 0x30b   : > { %906 = vmatprep.mubr.bf16.mxu1 %v437_v54  ;;  %p1391_p6 = scmp.lt.s32.totalorder %s1389_s9, %s1383_s16 }
 0x30c   : > { %v839_v3 = vadd.f32 %v1342_v35, %v838_v52 }
 0x30d   : > { %p1392_p9 = por %p1391_p6, %p1390_p1 }
 0x30e   : > { %v840_v48 = vadd.f32 %v1344_v47, %v839_v3 }
 0x30f   : > { %p1393_p3 = pnand %p1392_p9, %p1386_p0 }
 0x310   : > { %v841_v5 = vadd.f32 %v1346_v34, %v840_v48 }
 0x312   : > { %v842_v11 = vadd.f32 %v1348_v38, %v841_v5  ;;  %907 = vmatmul.mubr.bf16.gmra.mrb[4].mxu1 %v436_v4 }
 0x314   : > { %v843_v58 = vadd.f32 %v1350_v49, %v842_v11 }
 0x316   : > { %v844_v59 = vrot.slane %v843_v58, 4 }
 0x318   : > { %v845_v6 = vadd.f32 %v844_v59, %v843_v58 }
 0x31a   : > { %v846_v8 = vrot.slane %v845_v6, 2 }
 0x31c   : > { %v847_v15 = vadd.f32 %v846_v8, %v845_v6 }
 0x31e   : > { %v848_v56 = vrot.slane %v847_v15, 1 }
 0x320   : > { %v849_v9 = vadd.f32 %v848_v56, %v847_v15 }
 0x322   : > { %1351 = vrcp.f32 %v849_v9 }
 0x32c   : > { %v1352_v61 = vpop.eup %1351 }
 0x3dd   : > { %v1122_v60 = vpop.f32.mrb[0].mxu1 }
 0x3de   : > { %v1123_v10 = vpop.f32.mrb[1].mxu1 }
 0x3df   : > { %v1124_v12 = vadd.f32 %v1123_v10, %v1122_v60  ;;  %v1125_v13 = vpop.f32.mrb[2].mxu1 }
 0x3e0   : > { %v1126_v19 = vpop.f32.mrb[3].mxu1 }
 0x3e1   : > { %v916_v62 = vmul.f32 %v1352_v61, %v1124_v12  ;;  %v1127_v16 = vadd.f32 %v1126_v19, %v1125_v13 }
 0x3e3   : > { %v928_v20 = vmul.f32 %v927_v14, %v916_v62  ;;  %v917_v23 = vmul.f32 %v1352_v61, %v1127_v16 }
 0x3e5   : > { %v932_v22 = vadd.f32 %v928_v20, %v922_v18  ;;  %v929_v17 = vmul.f32 %v927_v14, %v917_v23  ;;  %v1128_v0 = vpop.f32.mrb[4].mxu1 }
 0x3e6   : > { %v1129_v24 = vpop.f32.mrb[5].mxu1 }
 0x3e7   : > { %936 = vst [vmem:[%s1699_s11] sm:$0xff] %v932_v22  ;;  %v933_v25 = vadd.f32 %v929_v17, %v923_v63  ;;  %v1130_v21 = vadd.f32 %v1129_v24, %v1128_v0  ;;  %v1131_v43 = vpop.f32.mrb[6].mxu1 }
 0x3e8   : > { %v1132_v2 = vpop.f32.mrb[7].mxu1 }
 0x3e9   : > { %937 = vst [vmem:[%s1699_s11 + $0x8] sm:$0xff] %v933_v25  ;;  %v918_v26 = vmul.f32 %v1352_v61, %v1130_v21  ;;  %v1133_v33 = vadd.f32 %v1132_v2, %v1131_v43 }
 0x3eb   : > { %v930_v41 = vmul.f32 %v927_v14, %v918_v26  ;;  %v919_v45 = vmul.f32 %v1352_v61, %v1133_v33 }
 0x3ed   : > { %v934_v55 = vadd.f32 %v930_v41, %v924_v37  ;;  %v931_v27 = vmul.f32 %v927_v14, %v919_v45 }
 0x3ef   : > { %938 = vst [vmem:[%s1699_s11 + $0x10] sm:$0xff] %v934_v55  ;;  %v935_v35 = vadd.f32 %v931_v27, %v925_v51 }
 0x3f1   : > { %939 = vst [vmem:[%s1699_s11 + $0x18] sm:$0xff] %v935_v35 }
 0x3f2   : > { %1396 = shalt.err (!%p1393_p3)
}
 0x3f3   : > { %s1397_s11 = scalar_lea.hbm %s2071_s23, 512  ;;  %s1401_s24 = scalar_lea.hbm %s2142_s4, 2048 }
 0x3f4   : > { %p1398_p11 = scmp.ne.s32.totalorder %s2071_s23, %s1397_s11  ;;  %p1402_p8 = scmp.lt.u32.totalorder %s2071_s23, %s2142_s4 }
 0x3f5   : > { %p1403_p10 = scmp.lt.u32.totalorder %s1401_s24, %s1397_s11  ;;  %p1405_p7 = scmp.lt.u32.totalorder %s1397_s11, %s2071_s23 }
 0x3f6   : > { %p1399_p13 = pnand %p1398_p11, %p2154_p2 }
 0x3f7   : > { %p1404_p12 = por %p1403_p10, %p1402_p8 }
 0x3f8   : > { %p1400_p5 = pneg %p1399_p13 }
 0x3f9   : > { %p1406_p4 = por %p1405_p7, %p1404_p12 }
 0x3fb   : > { %p1407_p0 = pnand %p1406_p4, %p1400_p5 }
 0x3fd   : > { %1410 = shalt.err (!%p1407_p0)
}
 0x3fe   : > { %s1512_s28 = smov 128   ;;  %s1513_s16 = smov 256  }
 0x3ff   : > { %s1514_s20 = smov 8  }
 0x400   : > { %1174 = dma.vmem_to_hbm [thread:$0]  (%p2154_p2), %s2066_s10, 512, %s2071_s23, %s2077_s5, %s1512_s28, %s1513_s16, %s1514_s20  }
 0x401 PF: > { %p1185_p1 = scmp.ge.s32.totalorder %s1505_s26, 2  ;;  %s970_s30 = sand.u32 1, %s1465_s17  }
 0x402   : > { %p2155_p6 = scmp.ne.s32.totalorder %s2150_s15, 0  ;;  %s971_s9 = scalar_lea.sflag [#allocation6], %s970_s30 }
 0x404   : > { %p1181_p9 = pnand %p1185_p1, %p2155_p6 }
 0x406   : > { %1460 = dma.done.wait (!%p1181_p9), %s971_s9, 512  }
 0x407   : > { %1462 = vsyncadd (!%p1181_p9), %s971_s9, 4294966784  ;;  %s21_s26 = sadd.s32 1, %s1505_s26   ;;  %s2156_s12 = sld [smem:[#allocation10_spill]] }
 0x408   : > { %p18_p3 = scmp.ge.s32.totalorder %s21_s26, 6   ;;  %s2157_s17 = smov %s1469_s18 }
 0x409   : > { %s2158_s18 = smov %s1473_s19  ;;  %s2159_s19 = smov %s1633_s14 }
 0x40a   : > { %s2160_s20 = smov %s1481_s21  ;;  %s2161_s21 = smov %s1485_s22 }
 0x40b   : > { %s2162_s22 = smov %s1630_s13  ;;  %s2163_s23 = smov %s1497_s3 }
 0x40c   : > { %s2164_s24 = smov %s1501_s25  ;;  %s2165_s3 = smov %s2168_s29 }
 0x40d   : > { %s2166_s25 = smov %s2156_s12  ;;  %20 = sbr.rel (!%p18_p3) target bundleno = 11 (0xb), region = 87 }
 0x414   :  { %976 = vsyncpa [#allocation5], 1 }
 0x415   :  { %978 = vsyncpa [#allocation5 + $0x1], 1 }
 0x416   :  { %979 = vsyncpa [#allocation6], 1 }
 0x417   :  { %981 = vsyncpa [#allocation6 + $0x1], 1 }

</bundles_post_ra>
